<compile_context>
chip_gen: v7x
topology: tpu7x:2x2x1
jax: 0.10.0
libtpu: 0.0.40
codegen_flags: <defaults>
</compile_context>

<pallas_src>
import jax
import jax.numpy as jnp
from jax.experimental import pallas as pl
from jax.experimental.pallas import tpu as pltpu


LANES = 128           # lane-dense last dim (vreg lane width)
MAX_TILE_ROWS = 4096  # (4096, 128) f32 block = 2 MiB; ~8 MiB double-buffered in+out
MIN_BLOCKS = 4        # aim for >=4 grid steps so both v7x TCs stream


def _round_up(x: int, m: int) -> int:
    return ((x + m - 1) // m) * m


def linreg_kernel(x_ref, wb_ref, o_ref):
    # x_ref: (TM, 128) f32 VMEM tile of the lane-dense input slab
    # wb_ref: (2,) f32 SMEM -> wb_ref[0] = W[0,0], wb_ref[1] = b[0]
    # y = x * W[0,0] + b[0]   (exact semantics of nn.Linear(1, 1))
    o_ref[...] = x_ref[...] * wb_ref[0] + wb_ref[1]


def linear_regression_forward(x, w, b):
    """x: (N, 1) f32, w: (1, 1) f32, b: (1,) f32  ->  (N, 1) f32."""
    n = x.shape[0]
    dtype = x.dtype

    # ---- lane-dense repacking (wrapper-side layout plumbing only) ----
    x_flat = x.reshape(-1)                         # (N,)
    rows = pl.cdiv(n, LANES)
    rows_padded = max(8, _round_up(rows, 8))       # sublane-aligned slab height
    padded_elems = rows_padded * LANES

    needs_pad = padded_elems != n
    if needs_pad:
        # Only copy made by the wrapper; skipped entirely when N % 1024 == 0.
        x_flat = jnp.pad(x_flat, (0, padded_elems - n))
    x2d = x_flat.reshape(rows_padded, LANES)       # lane-dense slab

    # Single tiny SMEM operand carrying both parameters.
    wb = jnp.concatenate([w.reshape(1), b.reshape(1)]).astype(dtype)  # (2,)

    # Block size: big (up to 2 MiB) but keep >=MIN_BLOCKS grid steps when the
    # data allows it, so a v7x megacore shards the "parallel" axis usefully.
    tile_rows = min(MAX_TILE_ROWS,
                    max(8, _round_up(pl.cdiv(rows_padded, MIN_BLOCKS), 8)))
    grid = (pl.cdiv(rows_padded, tile_rows),)      # ragged last block is fine

    call_kwargs = {}
    if needs_pad:
        # x2d is a private padded copy -> let the output reuse its HBM buffer.
        call_kwargs["input_output_aliases"] = {0: 0}

    out2d = pl.pallas_call(
        linreg_kernel,
        out_shape=jax.ShapeDtypeStruct((rows_padded, LANES), dtype),
        grid=grid,
        in_specs=[
            # Streaming input: (TM, 128) tiles, auto double-buffered.
            pl.BlockSpec((tile_rows, LANES), lambda i: (i, 0)),
            # Both scalar params live in SMEM (no VMEM DMA / vreg broadcast).
            pl.BlockSpec(memory_space=pltpu.MemorySpace.SMEM),
        ],
        out_specs=pl.BlockSpec((tile_rows, LANES), lambda i: (i, 0)),
        compiler_params=pltpu.CompilerParams(
            dimension_semantics=("parallel",),     # shards across 2 TCs on v7x
        ),
        **call_kwargs,
    )(x2d, wb)

    # Undo the layout plumbing; the slice exists only when padding was added.
    out_flat = out2d.reshape(-1)
    if needs_pad:
        out_flat = out_flat[:n]
    return out_flat.reshape(n, 1)


if __name__ == "__main__":
    key = jax.random.PRNGKey(0)

    # Small batch of scalar features, consistent with nn.Linear(1, 1).
    N = 8
    x = jax.random.normal(key, (N, 1), dtype=jnp.float32)

    # Deterministic parameter init (synthetic, not a checkpoint load).
    w = jnp.array([[0.7]], dtype=jnp.float32)   # weight: (out_features=1, in_features=1)
    b = jnp.array([0.3], dtype=jnp.float32)     # bias:   (out_features=1,)

    y = linear_regression_forward(x, w, b)
    y = jax.block_until_ready(y)

    # Sanity check against the plain-JAX reference of nn.Linear(1, 1).
    y_ref = x @ w.T + b
    assert y.shape == (N, 1)
    assert jnp.allclose(y, y_ref, atol=1e-6), "mismatch vs reference"

    print("KERNEL_OK")
</pallas_src>

<mosaic_0001>
module attributes {stable_mosaic.version = 11 : i64} {
  func.func @linreg_kernel(%arg0: i32, %arg1: memref<8x128xf32, #tpu.memory_space<vmem>>, %arg2: memref<2xf32, #tpu.memory_space<smem>>, %arg3: memref<8x128xf32, #tpu.memory_space<vmem>>) attributes {dimension_semantics = [#tpu.dimension_semantics<parallel>], iteration_bounds = array<i64: 1>, scalar_prefetch = 0 : i64, scratch_operands = 0 : i64, tpu.core_type = #tpu.core_type<tc>, window_params = [{transform_indices = @transform_0, window_bounds = array<i64: 8, 128>}, {transform_indices = @transform_1, window_bounds = array<i64: 2>}, {transform_indices = @transform_2, window_bounds = array<i64: 8, 128>}]} {
    %c0 = arith.constant 0 : index
    %c0_0 = arith.constant 0 : index
    %0 = vector.load %arg1[%c0, %c0_0] : memref<8x128xf32, #tpu.memory_space<vmem>>, vector<8x128xf32>
    %c0_1 = arith.constant 0 : index
    %1 = memref.load %arg2[%c0_1] : memref<2xf32, #tpu.memory_space<smem>>
    %2 = vector.broadcast %1 : f32 to vector<8x128xf32>
    %3 = arith.mulf %0, %2 : vector<8x128xf32>
    %c1 = arith.constant 1 : index
    %4 = memref.load %arg2[%c1] : memref<2xf32, #tpu.memory_space<smem>>
    %5 = vector.broadcast %4 : f32 to vector<8x128xf32>
    %6 = arith.addf %3, %5 : vector<8x128xf32>
    %c0_2 = arith.constant 0 : index
    %c0_3 = arith.constant 0 : index
    %7 = vector.load %arg3[%c0_2, %c0_3] : memref<8x128xf32, #tpu.memory_space<vmem>>, vector<8x128xf32>
    tpu.vector_store %arg3[%c0_2, %c0_3], %6 {strides = array<i32>} : memref<8x128xf32, #tpu.memory_space<vmem>>, vector<8x128xf32>,
    return
  }
  func.func @transform_0(%arg0: i32) -> (i32, i32) {
    %c0_i32 = arith.constant 0 : i32
    %c0_i32_0 = arith.constant 0 : i32
    return %arg0, %c0_i32 : i32, i32
  }
  func.func @transform_1(%arg0: i32) -> i32 {
    %c0_i32 = arith.constant 0 : i32
    %c0_i32_0 = arith.constant 0 : i32
    return %c0_i32 : i32
  }
  func.func @transform_2(%arg0: i32) -> (i32, i32) {
    %c0_i32 = arith.constant 0 : i32
    %c0_i32_0 = arith.constant 0 : i32
    return %arg0, %c0_i32 : i32, i32
  }
}

</mosaic_0001>

<bundles_post_ra>
// kernel: tpu_custom_call.1
= control target key start
LH: loop header
LB: loop body
LE: loop exit
PB: predicated region body
PF: predicated region fallthrough
CT: control target
= control target key end

     0   :  { %7 = vsyncpa [#allocation3], 0  ;;  %s172_s0 = inlined_call_operand.hbm [shape: f32[8,128], index: 0, kind: input, shape index: {}, may-alias: {0,2}]   ;;  %s173_s1 = inlined_call_operand.vmem [shape: f32[2], index: 1, kind: input, shape index: {}]   ;;  %s174_s2 = inlined_call_operand.hbm [shape: f32[8,128], index: 2, kind: output, shape index: {}, may-alias: {0,2}]  }
   0x1   :  { %8 = vsyncpa [#allocation5], 0 }
   0x2   :  { %9 = vsyncpa [#allocation4], 0  ;;  %s26_s11 = sshll.u32 %s173_s1, 4  ;;  %s127_s12 = smov [#allocation2]   ;;  %s27_s11 = int_to_ptr.vmem [resolvable:$true] %s26_s11 }
   0x3   :  { %s16_s13 = sshll.u32 %s127_s12, 4  ;;  %s65_s16 = scalar_lea.hbm %s172_s0, 128  ;;  %s17_s13 = int_to_ptr.vmem [resolvable:$true] %s16_s13 }
   0x4   :  { %p66_p0 = scmp.ne.s32.totalorder %s172_s0, %s65_s16  ;;  %p69_p1 = scmp.lt.u32.totalorder %s65_s16, %s172_s0 }
   0x6   :  { %p71_p2 = pnand %p69_p1, %p66_p0 }
   0x8   :  { %74 = shalt.err (!%p71_p2)
}
   0x9   :  { %s75_s21 = scalar_lea.vmem %s17_s13, 128  ;;  %p80_p4 = scmp.lt.s32.totalorder %s17_s13, %s17_s13 }
   0xa   :  { %p76_p3 = scmp.ne.s32.totalorder %s17_s13, %s75_s21  ;;  %p81_p5 = scmp.lt.s32.totalorder %s75_s21, %s75_s21 }
   0xc   :  { %p82_p6 = por %p81_p5, %p80_p4 }
   0xe   :  { %p83_p7 = pnand %p82_p6, %p76_p3 }
  0x10   :  { %86 = shalt.err (!%p83_p7)
}
  0x11   :  { %19 = dma.hbm_to_vmem [thread:$0]  %s172_s0, 128, %s17_s13, [#allocation3]  }
  0x12   :  { %s87_s23 = scalar_lea.vmem %s27_s11, 16  ;;  %p92_p9 = scmp.lt.s32.totalorder %s27_s11, %s27_s11 }
  0x13   :  { %p88_p8 = scmp.ne.s32.totalorder %s27_s11, %s87_s23  ;;  %p93_p10 = scmp.lt.s32.totalorder %s87_s23, %s87_s23 }
  0x15   :  { %p94_p11 = por %p93_p10, %p92_p9 }
  0x17   :  { %p95_p12 = pnand %p94_p11, %p88_p8 }
  0x19   :  { %98 = shalt.err (!%p95_p12)
}
  0x1a   :  { %s128_s24 = smov [#allocation6]  }
  0x1b   :  { %29 = dma.vmem_to_smem %s27_s11, 16, %s128_s24, [#allocation5]  }
  0x1c   :  { %121 = dma.done.wait [#allocation3], 128  }
  0x1d   :  { %122 = vsyncadd [#allocation3], 4294967168 }
  0x1e   :  { %123 = dma.done.wait [#allocation5], 16  }
  0x1f   :  { %124 = vsyncadd [#allocation5], 4294967280 }
  0x20   :  { %36 = sfence }
  0x21   :  { %s38_s25 = sld [smem:[#allocation6]]  ;;  %s61_s26 = sld [smem:[#allocation6 + $0x1]]  ;;  %v37_v0 = vld [vmem:[#allocation2] sm:$0xff] }
  0x22   :  { %s129_s0 = smov [#allocation7]  }
  0x23   :  { %s51_s27 = sshll.u32 %s129_s0, 4  ;;  %s52_s27 = int_to_ptr.vmem [resolvable:$true] %s51_s27 }
  0x24   :  { %s99_s28 = scalar_lea.vmem %s52_s27, 128  ;;  %p104_p0 = scmp.lt.s32.totalorder %s52_s27, %s52_s27 }
  0x25   :  { %p100_p13 = scmp.ne.s32.totalorder %s52_s27, %s99_s28  ;;  %p105_p1 = scmp.lt.s32.totalorder %s99_s28, %s99_s28 }
  0x27   :  { %v39_v1 = vstv %s38_s25  ;;  %v42_v2 = vstv %s61_s26  ;;  %p106_p2 = por %p105_p1, %p104_p0 }
  0x28   :  { %v40_v3 = vmul.f32 %v39_v1, %v37_v0 }
  0x29   :  { %p107_p3 = pnand %p106_p2, %p100_p13 }
  0x2a   :  { %v43_v4 = vadd.f32 %v42_v2, %v40_v3 }
  0x2c   :  { %44 = vst [vmem:[#allocation7] sm:$0xff] %v43_v4 }
  0x2d   :  { %110 = shalt.err (!%p107_p3)
}
  0x2e   :  { %s111_s3 = scalar_lea.hbm %s174_s2, 128 }
  0x2f   :  { %p112_p4 = scmp.ne.s32.totalorder %s174_s2, %s111_s3  ;;  %p115_p5 = scmp.lt.u32.totalorder %s111_s3, %s174_s2 }
  0x31   :  { %p117_p6 = pnand %p115_p5, %p112_p4 }
  0x33   :  { %120 = shalt.err (!%p117_p6)
}
  0x34   :  { %54 = dma.vmem_to_hbm [thread:$0]  %s52_s27, 128, %s174_s2, [#allocation4]  }
  0x35   :  { %125 = dma.done.wait [#allocation4], 128  }
  0x36   :  { %126 = vsyncadd [#allocation4], 4294967168 }
  0x37   :  { %58 = vsyncpa [#allocation3], 1 }
  0x38   :  { %59 = vsyncpa [#allocation4], 1 }
  0x39   :  { %60 = vsyncpa [#allocation5], 1 }

</bundles_post_ra>
